<compile_context>
chip_gen: v5e
topology: v5e:2x2
jax: 0.10.0
libtpu: 0.0.40
codegen_flags: <defaults>
</compile_context>

<pallas_src>
import functools

import jax
import jax.numpy as jnp
from jax.experimental import pallas as pl
from jax.experimental.pallas import tpu as pltpu


def _round_up(x, m):
    return ((x + m - 1) // m) * m


def _pad_lane_dim(d):
    """Lane (last-dim) padding policy.

    * d already a multiple of 128 -> keep (unmasked stores for free).
    * d < 128 (tiny hidden / n_class) -> keep; padding to 128 would multiply
      the dominant HBM store traffic by up to 4x just to avoid vst.msk.
    * otherwise pad to the next multiple of 128 (cheap relative pad, unlocks
      unmasked stores on the big h writeback).
    """
    if d % 128 == 0 or d < 128:
        return d
    return _round_up(d, 128)


def _vmem_limit_bytes():
    """Per-generation VMEM budget: ~3/4 of physical, capped at 100 MiB.

    v5e/v6e (128 MiB physical) -> 96 MiB; v7x (64 MiB physical) -> 48 MiB.
    """
    try:
        cap = pltpu.get_tpu_info().vmem_capacity_bytes
    except Exception:  # no TPU info available; be conservative (v7x-safe)
        cap = 64 * 1024 * 1024
    return min((cap * 3) // 4, 100 * 1024 * 1024)


def _choose_row_tile(N, D, H_pad, C_pad, itemsize, row_tile, budget):
    """Pick the row tile TN (multiple of 8).

    * At most ceil(N/2) rounded to 8, so both v7x TensorCores get work under
      dimension_semantics=("parallel",).
    * Shrunk until double-buffered streamed tiles plus (double-buffered)
      resident weights fit the VMEM budget (matters on v7x's 64 MiB).
    """
    two_core_cap = max(8, _round_up(-(-N // 2), 8))
    tn = max(8, min(row_tile, two_core_cap, _round_up(N, 8)))
    tn = _round_up(tn, 8)
    resident = 2 * (D * H_pad + H_pad * C_pad + H_pad + C_pad) * itemsize
    while tn > 8:
        streamed = 2 * tn * (D + H_pad + C_pad) * itemsize
        if resident + streamed <= budget:
            break
        tn = max(8, _round_up(tn // 2, 8))
    return tn


def ins_mlp_kernel(x_ref, w1_ref, b1_ref, w2_ref, b2_ref, prob_ref, h_ref):
    # feature_ex: Linear + ReLU.  MXU matmul, f32 accumulation, f32 epilogue.
    x = x_ref[...]
    pre = jnp.dot(x, w1_ref[...], preferred_element_type=jnp.float32) + b1_ref[...]
    h = jnp.maximum(pre, 0.0)
    h_ref[...] = h.astype(h_ref.dtype)

    # classifier: Linear to n_class logits.
    logits = (
        jnp.dot(h.astype(w2_ref.dtype), w2_ref[...],
                preferred_element_type=jnp.float32)
        + b2_ref[...]
    )
    prob_ref[...] = logits.astype(prob_ref.dtype)


def prepare_ins_mlp_params(w1, b1, w2, b2, compute_dtype=None):
    """Pad/cast the weights ONCE, outside the jitted per-call forward.

    Returns ((w1_p, b1_p, w2_p, b2_p), (h_dim, n_class)).  Zero-padding keeps
    the math exact: relu(0) = 0 and zero rows/cols of W2 add nothing.
    Set compute_dtype=jnp.bfloat16 for ~2-4x MXU throughput and halved weight
    read bytes (accumulation stays f32 inside the kernel).
    """
    D, H = w1.shape
    H2, C = w2.shape
    assert H2 == H, "feature_ex output dim must match classifier input dim"
    cd = jnp.dtype(compute_dtype) if compute_dtype is not None else w1.dtype
    H_pad = _pad_lane_dim(H)
    C_pad = _pad_lane_dim(C)
    w1_p = jnp.pad(w1, ((0, 0), (0, H_pad - H))).astype(cd)
    w2_p = jnp.pad(w2, ((0, H_pad - H), (0, C_pad - C))).astype(cd)
    # Biases stay f32: they feed the f32 accumulation epilogue.
    b1_p = jnp.pad(b1.reshape(1, -1), ((0, 0), (0, H_pad - H))).astype(jnp.float32)
    b2_p = jnp.pad(b2.reshape(1, -1), ((0, 0), (0, C_pad - C))).astype(jnp.float32)
    return (w1_p, b1_p, w2_p, b2_p), (H, C)


def ins_mlp_forward(inp, w1_p, b1_p, w2_p, b2_p, *, h_dim, n_class, row_tile=512):
    """inp: (1, N, D).  Returns (class_prob (N, n_class), h (N, h_dim))."""
    x = jnp.squeeze(inp, axis=0)            # module glue: input.squeeze(0)
    if x.dtype != w1_p.dtype:               # bf16-operand path (opt-in)
        x = x.astype(w1_p.dtype)
    N, D = x.shape
    H_pad = w1_p.shape[1]
    C_pad = w2_p.shape[1]
    out_dtype = inp.dtype

    itemsize = max(jnp.dtype(out_dtype).itemsize, jnp.dtype(x.dtype).itemsize)
    vmem_limit = int(_vmem_limit_bytes())
    TN = _choose_row_tile(N, D, H_pad, C_pad, itemsize, row_tile,
                          (vmem_limit * 9) // 10)
    num_tiles = pl.cdiv(N, TN)  # ragged last tile: Pallas masks the writeback

    flops = 2 * N * (D * H_pad + H_pad * C_pad)
    bytes_accessed = itemsize * (
        N * D + D * H_pad + H_pad * C_pad + H_pad + C_pad
        + N * H_pad + N * C_pad)

    grid_spec = pltpu.PrefetchScalarGridSpec(
        num_scalar_prefetch=0,
        grid=(num_tiles,),
        in_specs=[
            pl.BlockSpec((TN, D), lambda i: (i, 0)),         # x row tile (streamed)
            pl.BlockSpec((D, H_pad), lambda i: (0, 0)),      # W1 (VMEM-resident)
            pl.BlockSpec((1, H_pad), lambda i: (0, 0)),      # b1 (resident)
            pl.BlockSpec((H_pad, C_pad), lambda i: (0, 0)),  # W2 (resident)
            pl.BlockSpec((1, C_pad), lambda i: (0, 0)),      # b2 (resident)
        ],
        out_specs=[
            pl.BlockSpec((TN, C_pad), lambda i: (i, 0)),     # class_prob tile
            pl.BlockSpec((TN, H_pad), lambda i: (i, 0)),     # h tile
        ],
    )

    prob, h = pl.pallas_call(
        ins_mlp_kernel,
        out_shape=(
            jax.ShapeDtypeStruct((N, C_pad), out_dtype),
            jax.ShapeDtypeStruct((N, H_pad), out_dtype),
        ),
        grid_spec=grid_spec,
        compiler_params=pltpu.CompilerParams(
            dimension_semantics=("parallel",),
            vmem_limit_bytes=vmem_limit,
        ),
        cost_estimate=pl.CostEstimate(
            flops=flops, transcendentals=0, bytes_accessed=bytes_accessed),
    )(x, w1_p, b1_p, w2_p, b2_p)

    # Conditional unpadding (no-op in the common unpadded / 128-multiple case);
    # reshape(-1, n_class) kept for exact module semantics.
    class_prob = prob if C_pad == n_class else prob[:, :n_class]
    class_prob = class_prob.reshape(-1, n_class)
    h_out = h if H_pad == h_dim else h[:, :h_dim]
    return class_prob, h_out


if __name__ == "__main__":
    # Small shapes consistent with the module: a bag of N instances with D
    # features, hidden size H, n_class classes.  N=13 with TN=8 exercises the
    # ragged last row tile; H=32 / C=4 exercise the "don't lane-pad tiny dims"
    # path.
    N, D, H, C = 13, 32, 32, 4

    key = jax.random.PRNGKey(0)
    k_in, k_w1, k_b1, k_w2, k_b2 = jax.random.split(key, 5)

    inp = jax.random.normal(k_in, (1, N, D), dtype=jnp.float32)
    w1 = jax.random.normal(k_w1, (D, H), dtype=jnp.float32) * 0.1
    b1 = jax.random.normal(k_b1, (H,), dtype=jnp.float32) * 0.1
    w2 = jax.random.normal(k_w2, (H, C), dtype=jnp.float32) * 0.1
    b2 = jax.random.normal(k_b2, (C,), dtype=jnp.float32) * 0.1

    # Pad/cast weights ONCE (outside the jitted per-call path).  Use
    # compute_dtype=jnp.bfloat16 in production if the downstream MIL head
    # tolerates it; the demo keeps f32 so the atol=1e-5 check is tight.
    (w1_p, b1_p, w2_p, b2_p), (h_dim, n_class) = prepare_ins_mlp_params(
        w1, b1, w2, b2, compute_dtype=jnp.float32)

    fwd = jax.jit(functools.partial(ins_mlp_forward, h_dim=h_dim, n_class=n_class))
    class_prob, h = fwd(inp, w1_p, b1_p, w2_p, b2_p)
    jax.block_until_ready((class_prob, h))

    # Reference check in plain JAX.
    xr = jnp.squeeze(inp, axis=0)
    h_ref = jnp.maximum(xr @ w1 + b1, 0.0)
    prob_ref = (h_ref @ w2 + b2).reshape(-1, C)
    assert class_prob.shape == (N, C) and h.shape == (N, H)
    assert jnp.allclose(h, h_ref, atol=1e-5), "h mismatch"
    assert jnp.allclose(class_prob, prob_ref, atol=1e-5), "class_prob mismatch"

    print("KERNEL_OK")
</pallas_src>

<mosaic_0001>
module attributes {stable_mosaic.version = 11 : i64} {
  func.func @ins_mlp_kernel(%arg0: i32, %arg1: memref<8x32xf32, #tpu.memory_space<vmem>>, %arg2: memref<32x32xf32, #tpu.memory_space<vmem>>, %arg3: memref<1x32xf32, #tpu.memory_space<vmem>>, %arg4: memref<32x4xf32, #tpu.memory_space<vmem>>, %arg5: memref<1x4xf32, #tpu.memory_space<vmem>>, %arg6: memref<8x4xf32, #tpu.memory_space<vmem>>, %arg7: memref<8x32xf32, #tpu.memory_space<vmem>>) attributes {dimension_semantics = [#tpu.dimension_semantics<parallel>], iteration_bounds = array<i64: 2>, scalar_prefetch = 0 : i64, scratch_operands = 0 : i64, tpu.core_type = #tpu.core_type<tc>, window_params = [{transform_indices = @transform_0, window_bounds = array<i64: 8, 32>}, {pipeline_mode = #tpu.pipeline_mode<synchronous>, transform_indices = @transform_1, window_bounds = array<i64: 32, 32>}, {pipeline_mode = #tpu.pipeline_mode<synchronous>, transform_indices = @transform_2, window_bounds = array<i64: 1, 32>}, {pipeline_mode = #tpu.pipeline_mode<synchronous>, transform_indices = @transform_3, window_bounds = array<i64: 32, 4>}, {pipeline_mode = #tpu.pipeline_mode<synchronous>, transform_indices = @transform_4, window_bounds = array<i64: 1, 4>}, {transform_indices = @transform_5, window_bounds = array<i64: 8, 4>}, {transform_indices = @transform_6, window_bounds = array<i64: 8, 32>}]} {
    %c0 = arith.constant 0 : index
    %c0_0 = arith.constant 0 : index
    %0 = vector.load %arg1[%c0, %c0_0] : memref<8x32xf32, #tpu.memory_space<vmem>>, vector<8x32xf32>
    %c0_1 = arith.constant 0 : index
    %c0_2 = arith.constant 0 : index
    %1 = vector.load %arg2[%c0_1, %c0_2] : memref<32x32xf32, #tpu.memory_space<vmem>>, vector<32x32xf32>
    %cst = arith.constant dense<0.000000e+00> : vector<8x32xf32>
    %2 = tpu.matmul %0, %1, %cst {dimension_numbers = #tpu.dot_dimension_numbers<[1], [0], [0], [1], [0, 0, 1, 1], [], []>} : vector<8x32xf32>, vector<32x32xf32>, vector<8x32xf32> -> vector<8x32xf32>
    %c0_3 = arith.constant 0 : index
    %c0_4 = arith.constant 0 : index
    %3 = vector.load %arg3[%c0_3, %c0_4] : memref<1x32xf32, #tpu.memory_space<vmem>>, vector<1x32xf32>
    %4 = vector.broadcast %3 : vector<1x32xf32> to vector<8x32xf32>
    %5 = arith.addf %2, %4 : vector<8x32xf32>
    %cst_5 = arith.constant 0.000000e+00 : f32
    %6 = vector.broadcast %cst_5 : f32 to vector<8x32xf32>
    %7 = arith.maximumf %5, %6 : vector<8x32xf32>
    %c0_6 = arith.constant 0 : index
    %c0_7 = arith.constant 0 : index
    %8 = vector.load %arg7[%c0_6, %c0_7] : memref<8x32xf32, #tpu.memory_space<vmem>>, vector<8x32xf32>
    tpu.vector_store %arg7[%c0_6, %c0_7], %7 {strides = array<i32>} : memref<8x32xf32, #tpu.memory_space<vmem>>, vector<8x32xf32>,
    %c0_8 = arith.constant 0 : index
    %c0_9 = arith.constant 0 : index
    %9 = vector.load %arg4[%c0_8, %c0_9] : memref<32x4xf32, #tpu.memory_space<vmem>>, vector<32x4xf32>
    %cst_10 = arith.constant dense<0.000000e+00> : vector<8x4xf32>
    %10 = tpu.matmul %7, %9, %cst_10 {dimension_numbers = #tpu.dot_dimension_numbers<[1], [0], [0], [1], [0, 0, 1, 1], [], []>} : vector<8x32xf32>, vector<32x4xf32>, vector<8x4xf32> -> vector<8x4xf32>
    %c0_11 = arith.constant 0 : index
    %c0_12 = arith.constant 0 : index
    %11 = vector.load %arg5[%c0_11, %c0_12] : memref<1x4xf32, #tpu.memory_space<vmem>>, vector<1x4xf32>
    %12 = vector.broadcast %11 : vector<1x4xf32> to vector<8x4xf32>
    %13 = arith.addf %10, %12 : vector<8x4xf32>
    %c0_13 = arith.constant 0 : index
    %c0_14 = arith.constant 0 : index
    %14 = vector.load %arg6[%c0_13, %c0_14] : memref<8x4xf32, #tpu.memory_space<vmem>>, vector<8x4xf32>
    tpu.vector_store %arg6[%c0_13, %c0_14], %13 {strides = array<i32>} : memref<8x4xf32, #tpu.memory_space<vmem>>, vector<8x4xf32>,
    return
  }
  func.func @transform_0(%arg0: i32) -> (i32, i32) {
    %c0_i32 = arith.constant 0 : i32
    %c0_i32_0 = arith.constant 0 : i32
    return %arg0, %c0_i32 : i32, i32
  }
  func.func @transform_1(%arg0: i32) -> (i32, i32) {
    %c0_i32 = arith.constant 0 : i32
    %c0_i32_0 = arith.constant 0 : i32
    %c0_i32_1 = arith.constant 0 : i32
    return %c0_i32, %c0_i32_0 : i32, i32
  }
  func.func @transform_2(%arg0: i32) -> (i32, i32) {
    %c0_i32 = arith.constant 0 : i32
    %c0_i32_0 = arith.constant 0 : i32
    %c0_i32_1 = arith.constant 0 : i32
    return %c0_i32, %c0_i32_0 : i32, i32
  }
  func.func @transform_3(%arg0: i32) -> (i32, i32) {
    %c0_i32 = arith.constant 0 : i32
    %c0_i32_0 = arith.constant 0 : i32
    %c0_i32_1 = arith.constant 0 : i32
    return %c0_i32, %c0_i32_0 : i32, i32
  }
  func.func @transform_4(%arg0: i32) -> (i32, i32) {
    %c0_i32 = arith.constant 0 : i32
    %c0_i32_0 = arith.constant 0 : i32
    %c0_i32_1 = arith.constant 0 : i32
    return %c0_i32, %c0_i32_0 : i32, i32
  }
  func.func @transform_5(%arg0: i32) -> (i32, i32) {
    %c0_i32 = arith.constant 0 : i32
    %c0_i32_0 = arith.constant 0 : i32
    return %arg0, %c0_i32 : i32, i32
  }
  func.func @transform_6(%arg0: i32) -> (i32, i32) {
    %c0_i32 = arith.constant 0 : i32
    %c0_i32_0 = arith.constant 0 : i32
    return %arg0, %c0_i32 : i32, i32
  }
}

</mosaic_0001>

<bundles_post_ra>
// kernel: ins_mlp_forward.1
= control target key start
LH: loop header
LB: loop body
LE: loop exit
PB: predicated region body
PF: predicated region fallthrough
CT: control target
= control target key end

     0   :  { %12 = vsyncpa [#allocation3], 0  ;;  %s713_s0 = inlined_call_operand.vmem [shape: f32[13,32], index: 0, kind: input, shape index: {}]   ;;  %s714_s1 = inlined_call_operand.vmem [shape: f32[32,32], index: 1, kind: input, shape index: {}]   ;;  %s715_s2 = inlined_call_operand.vmem [shape: f32[1,32], index: 2, kind: input, shape index: {}]   ;;  %s716_s3 = inlined_call_operand.vmem [shape: f32[32,4], index: 3, kind: input, shape index: {}]   ;;  %s717_s4 = inlined_call_operand.vmem [shape: f32[1,4], index: 4, kind: input, shape index: {}]   ;;  %s718_s5 = inlined_call_operand.vmem [shape: f32[13,4], index: 5, kind: output, shape index: {0}]   ;;  %s719_s6 = inlined_call_operand.hbm [shape: f32[13,32], index: 6, kind: output, shape index: {1}]  }
   0x1   :  { %14 = vsyncpa [#allocation3 + $0x1], 0  ;;  %s585_s21 = smov 0   ;;  %s587_s22 = smov 0  }
   0x2   :  { %s589_s23 = smov 0   ;;  %s591_s24 = smov 0  }
   0x3 LB: > { %s606_s25 = sadd.s32 4294967295, %s548_s24   ;;  %s432_s26 = sadd.s32 4294967294, %s548_s24   ;;  %s548_s24 = sphi %s591_s24, %s725_s24   ;;  %s544_s23 = sphi %s589_s23, %s724_s23   ;;  %s540_s22 = sphi %s587_s22, %s723_s22   ;;  %s536_s21 = sphi %s585_s21, %s722_s21  }
   0x4   : > { %s610_s27 = sadd.s32 1, %s548_s24   ;;  %s163_s28 = sadd.s32 1, %s544_s23 }
   0x5   : > { %s160_s29 = ssub.s32 %s548_s24, %s610_s27  ;;  %p173_p0 = scmp.ne.s32.totalorder %s544_s23, %s540_s22 }
   0x6   : > { %p161_p1 = scmp.eq.s32.totalorder %s160_s29, 0  ;;  %p174_p2 = scmp.eq.s32.totalorder %s606_s25, 1 }
   0x7   : > { %p179_p3 = scmp.ne.s32.totalorder %s540_s22, %s536_s21  ;;  %p180_p4 = scmp.eq.s32.totalorder %s432_s26, 1 }
   0x8   : > { %s621_s30 = scalar_select %p161_p1, %s544_s23, %s163_s28  }
   0x9   : > { %p623_p5 = por %p174_p2, %p173_p0  ;;  %p627_p6 = por %p180_p4, %p179_p3 }
   0xa   : > { %p435_p7 = scmp.ge.s32.totalorder %s548_s24, 1  ;;  %p217_p8 = scmp.lt.s32.totalorder %s548_s24, 3 }
   0xc   : > { %p218_p9 = pnand %p435_p7, %p217_p8 }
   0xd   : > { %p250_p10 = scmp.lt.s32.totalorder (!%p218_p9), %s606_s25, 1  ;;  %s247_s15 = sand.u32 (!%p218_p9), 1, %s540_s22  }
   0xe   : > { %221 = sbr.rel (%p218_p9) target bundleno = 286 (0x11e), region = 40  ;;  %s436_s19 = sshll.u32 (!%p218_p9), %s247_s15, 3 }
   0xf   : > { %s442_s26 = sshll.u32 (!%p218_p9), %s606_s25, 3  ;;  %s249_s10 = scalar_lea.vmem (!%p218_p9), [#allocation2], %s436_s19 }
  0x10   : > { %s344_s9 = scalar_lea.hbm (!%p218_p9), %s719_s6, %s442_s26  ;;  %s346_s11 = sshll.u32 (!%p218_p9), %s249_s10, 4  ;;  %s347_s11 = int_to_ptr.vmem [resolvable:$true] %s346_s11 }
  0x11   : > { %s348_s12 = sshll.u32 (!%p218_p9), %s344_s9, 4  ;;  %s331_s13 = scalar_lea.sflag (!%p218_p9), [#allocation3], %s247_s15  ;;  %s349_s12 = int_to_ptr.hbm [resolvable:$true] %s348_s12 }
  0x12   : > { %s500_s14 = sshra.s32 (!%p218_p9), %s349_s12, 4  ;;  %s506_s19 = scalar_lea.hbm (!%p218_p9), %s719_s6, 16  ;;  %s501_s14 = int_to_ptr.hbm [resolvable:$true] %s500_s14 }
  0x13   : > { %v262_v0 = vld [vmem:[%s714_s1 + $0x18] sm:$0xff]  ;;  %v261_v1 = vld [vmem:[%s714_s1 + $0x10] sm:$0xff]  ;;  %v260_v3 = vld [vmem:[%s714_s1 + $0x8] sm:$0xff]  ;;  %s647_s17 = scalar_select %p250_p10, %s606_s25, 1  ;;  %vm267_vm0 = vcmask 261120  }
  0x14   : > { %283 = vmatpush.msra.mxu0 %v262_v0  ;;  %v296_v2 = vld [vmem:[%s716_s3 + $0x18] sm:$0xff]  ;;  %v259_v4 = vld [vmem:[%s714_s1] sm:$0xff]  ;;  %v295_v6 = vld [vmem:[%s716_s3 + $0x10] sm:$0xff]  ;;  %s502_s16 = scalar_lea.hbm %s501_s14, 8  ;;  %p507_p0 = scmp.lt.s32.totalorder %s501_s14, %s719_s6 }
  0x15   : > { %316 = vmatpush.msra.mxu1 %v296_v2  ;;  %s437_s20 = sshll.u32 %s647_s17, 3  ;;  %v294_v7 = vld [vmem:[%s716_s3 + $0x8] sm:$0xff]  ;;  %v293_v8 = vld [vmem:[%s716_s3] sm:$0xff]  ;;  %p503_p11 = scmp.ne.s32.totalorder %s501_s14, %s502_s16 }
  0x16   : > { %284 = vmatpush.msra.mxu0 %v261_v1  ;;  %s253_s29 = scalar_lea.vmem %s713_s0, %s437_s20  ;;  %v484_v9 = vld [vmem:[%s715_s2] ss:$0 sm:$0xff]  ;;  %p508_p1 = scmp.lt.s32.totalorder %s506_s19, %s502_s16 }
  0x17   : > { %v258_v5 = vld [vmem:[%s253_s29] sm:$0xff]  ;;  %317 = vmatpush.msra.mxu1 %v295_v6  ;;  %p504_p12 = pnand %p503_p11, %p623_p5 }
  0x18   : > { %285 = vmatpush.msra.mxu0 %v260_v3  ;;  %p509_p2 = por %p508_p1, %p507_p0 }
  0x19   : > { %318 = vmatpush.msra.mxu1 %v294_v7  ;;  %p505_p13 = pneg %p504_p12 }
  0x1a   : > { %286 = vmatpush.msra.mxu0 %v259_v4 }
  0x1b   : > { %439 = vmatmul.msk.f32.vlgmr.msra.gmra.mxu0 %vm267_vm0, %v258_v5  ;;  %319 = vmatpush.msra.mxu1 %v293_v8  ;;  %p510_p3 = pnand %p509_p2, %p505_p13 }
  0x98   : > { %v288_v10 = vpop.f32.mrf.mxu0 }
  0x99   : > { %v289_v11 = vadd.f32 %v484_v9, %v288_v10 }
  0x9b   : > { %v291_v12 = vmax.f32 %v289_v11, 0.0 }
  0x9d   : > { %440 = vmatmul.msk.f32.vlgmr.msra.gmra.mxu1 %vm267_vm0, %v291_v12  ;;  %292 = vst.msk [vmem:[%s249_s10] sm:$0xff] %vm267_vm0, %v291_v12 }
  0x9e   : > { %513 = shalt.err (!%p510_p3)
}
  0x9f   : > { %445 = dma.vmem_to_hbm [thread:$0]  (%p623_p5), %s347_s11, 128, %s349_s12, %s331_s13   ;;  %v485_v13 = vld [vmem:[%s717_s4] ss:$0 sm:$0xff]  ;;  %vm324_vm1 = vcmask 31744  }
  0xa0   : > { %s257_s25 = scalar_lea.vmem %s718_s5, %s437_s20 }
 0x11a   : > { %v321_v14 = vpop.f32.mrf.mxu1 }
 0x11b   : > { %v322_v15 = vadd.f32 %v485_v13, %v321_v14 }
 0x11d   : > { %325 = vst.msk [vmem:[%s257_s25] sm:$0xff] %vm324_vm1, %v322_v15 }
 0x11e PF: > { %p451_p4 = scmp.ge.s32.totalorder %s548_s24, 2  ;;  %s367_s7 = sand.u32 1, %s536_s21  }
 0x11f   : > { %s368_s11 = scalar_lea.sflag [#allocation3], %s367_s7 }
 0x120   : > { %p448_p5 = pnand %p451_p4, %p627_p6 }
 0x122   : > { %p449_p7 = pneg %p448_p5 }
 0x124   : > { %531 = dma.done.wait (%p449_p7), %s368_s11, 128  }
 0x125   : > { %533 = vsyncadd (%p449_p7), %s368_s11, 4294967168  ;;  %p17_p8 = scmp.ge.s32.totalorder %s610_s27, 4   ;;  %s722_s21 = smov %s540_s22 }
 0x126   : > { %s723_s22 = smov %s544_s23  ;;  %s724_s23 = smov %s621_s30 }
 0x127   : > { %s725_s24 = smov %s610_s27  ;;  %19 = sbr.rel (!%p17_p8) target bundleno = 3 (0x3), region = 87 }
 0x12c   :  { %374 = vsyncpa [#allocation3], 1 }
 0x12d   :  { %376 = vsyncpa [#allocation3 + $0x1], 1 }

</bundles_post_ra>
